<compile_context>
chip_gen: v5e
topology: v5e:2x2
jax: 0.10.0
libtpu: 0.0.40
codegen_flags: <defaults>
</compile_context>

<pallas_src>
import functools

import jax
import jax.numpy as jnp
from jax.experimental import pallas as pl
from jax.experimental.pallas import tpu as pltpu


def _res2_kernel(*refs, width, nums, scale, kernel_size, dilation, padding,
                 halo, tile_t, true_t, mm_dtype):
    """One (batch, time-tile) grid step: all res2 branches unrolled in-kernel."""
    if halo > 0:
        xc_ref, halo_ref, w_ref, b_ref, sc_ref, sh_ref, o_ref = refs
    else:
        xc_ref, w_ref, b_ref, sc_ref, sh_ref, o_ref = refs

    x_c = xc_ref[0]                                   # (C, tile_t)
    out_dtype = x_c.dtype
    wp = tile_t + 2 * halo                            # working window width

    if halo > 0:
        hl = halo_ref[0, 0, :, :halo]                 # (C, halo)
        hr = halo_ref[0, 0, :, halo:]                 # (C, halo)
        # TODO(synk): replace with a manually-DMA'd overlapping (C, wp) window
        # (pl.ANY input + double-buffered scratch) to drop this VMEM copy.
        xw = jnp.concatenate([hl, x_c, hr], axis=1)   # (C, wp)  one concat / step
    else:
        xw = x_c

    # Columns whose global time position is outside [0, true_t) must act as the
    # zero padding of every branch conv (PyTorch per-conv zero padding).  This
    # also neutralises the unspecified values Pallas pads into the ragged last
    # time block, so no wrapper-side padding of x is needed.
    t_idx = pl.program_id(1)
    col = jax.lax.broadcasted_iota(jnp.int32, (1, wp), 1)
    gpos = col + (t_idx * tile_t - halo)
    valid = jnp.logical_and(gpos >= 0, gpos < true_t)  # (1, wp)

    y = None
    for i in range(nums):                              # nums is small & static
        xi = xw[i * width:(i + 1) * width, :].astype(jnp.float32)
        sp = xi if i == 0 else y + xi                  # residual add (f32)
        sp = jnp.where(valid, sp, 0.0)                 # zero-padding semantics
        sp_mm = sp.astype(mm_dtype)

        if kernel_size == 1:
            stacked = sp_mm                            # (width, wp)
        else:
            p = padding
            # Extended buffer with `p` slack columns per side; the slack content
            # only affects the outer halo columns, which never reach the tile
            # center (halo == nums*padding), so reuse sp's own edges.
            sp_ext = jnp.concatenate(
                [sp_mm[:, :p], sp_mm, sp_mm[:, wp - p:]], axis=1)  # (width, wp+2p)
            stacked = jnp.concatenate(
                [sp_ext[:, k * dilation:k * dilation + wp]
                 for k in range(kernel_size)], axis=0)             # (K*width, wp)

        # Single MXU matmul per branch: contraction dim = K*width.
        acc = jnp.dot(w_ref[i], stacked, preferred_element_type=jnp.float32)
        acc = jnp.maximum(acc + b_ref[i], 0.0)         # conv bias + ReLU (f32)
        y = acc * sc_ref[i] + sh_ref[i]                # BN affine (f32), fed forward

        o_ref[0, i * width:(i + 1) * width, :] = (
            y[:, halo:halo + tile_t].astype(out_dtype))

    if scale != 1:                                     # last split passes through
        o_ref[0, nums * width:, :] = x_c[nums * width:, :]


def res2conv1d_relu_bn(x, conv_w, conv_b, bn_gamma, bn_beta, bn_mean, bn_var, *,
                       scale=4, kernel_size=1, stride=1, padding=0, dilation=1,
                       eps=1e-5, tile_t=1024, mm_dtype=jnp.bfloat16):
    """x: (B, C, T), f32 or bf16.  conv_w: (nums, K, width_out, width_in)."""
    assert stride == 1, "Res2 block requires stride==1 for the residual adds"
    B, C, T = x.shape
    assert C % scale == 0
    width = C // scale
    nums = scale if scale == 1 else scale - 1
    # conv output length must equal T so the residual adds are shape-consistent
    assert 2 * padding == dilation * (kernel_size - 1)

    halo = nums * padding            # per-side halo of x needed by the branch cascade

    # Time tiling: lane blocks are 128-multiples unless they span all of T.
    if T <= tile_t:
        tile = T
    else:
        tile = max(128, (tile_t // 128) * 128)
        if tile >= T:
            tile = T
    num_t = -(-T // tile)            # ragged last block handled by Mosaic

    # Fold BN (inference running stats) into a per-channel affine.
    bn_sc = (bn_gamma / jnp.sqrt(bn_var + eps)).astype(jnp.float32)
    bn_sh = (bn_beta - bn_mean * bn_sc).astype(jnp.float32)
    b3 = conv_b[..., None].astype(jnp.float32)         # (nums, width, 1)
    sc3 = bn_sc[..., None]
    sh3 = bn_sh[..., None]

    # Fold the K taps into one (width, K*width) matmul weight per branch.
    w_stk = jnp.transpose(conv_w, (0, 2, 1, 3)).reshape(
        nums, width, kernel_size * width).astype(mm_dtype)

    inputs = [x]
    in_specs = [pl.BlockSpec((1, C, tile), lambda b, t: (b, 0, t))]
    halo_arr = None
    if halo > 0:
        # Tiny gather (B*num_t*C*2*halo elems) from UNPADDED x; out-of-range
        # columns are clipped here and zeroed in-kernel by the position mask.
        starts = jnp.arange(num_t) * tile
        off = jnp.arange(halo)
        cols = jnp.concatenate(
            [starts[:, None] - halo + off[None, :],
             starts[:, None] + tile + off[None, :]], axis=1)       # (num_t, 2H)
        cols = jnp.clip(cols, 0, T - 1)
        halo_arr = jnp.take(x, cols.reshape(-1), axis=2)
        halo_arr = jnp.transpose(
            halo_arr.reshape(B, C, num_t, 2 * halo), (0, 2, 1, 3))  # (B, nt, C, 2H)
        inputs.append(halo_arr)
        in_specs.append(pl.BlockSpec((1, 1, C, 2 * halo), lambda b, t: (b, t, 0, 0)))

    inputs += [w_stk, b3, sc3, sh3]
    in_specs += [
        pl.BlockSpec((nums, width, kernel_size * width), lambda b, t: (0, 0, 0)),
        pl.BlockSpec((nums, width, 1), lambda b, t: (0, 0, 0)),
        pl.BlockSpec((nums, width, 1), lambda b, t: (0, 0, 0)),
        pl.BlockSpec((nums, width, 1), lambda b, t: (0, 0, 0)),
    ]

    kernel = functools.partial(
        _res2_kernel, width=width, nums=nums, scale=scale,
        kernel_size=kernel_size, dilation=dilation, padding=padding,
        halo=halo, tile_t=tile, true_t=T, mm_dtype=mm_dtype)

    x_isz = x.dtype.itemsize
    mm_isz = jnp.dtype(mm_dtype).itemsize
    wp = tile + 2 * halo
    flops = 2 * B * nums * kernel_size * width * width * T
    bytes_accessed = int(
        2 * x.size * x_isz                                  # x in + out
        + w_stk.size * mm_isz
        + (b3.size + sc3.size + sh3.size) * 4
        + (0 if halo_arr is None else halo_arr.size * x_isz))

    # VMEM estimate: double-buffered in/out blocks + halo + params + in-kernel
    # working buffers (xw, f32 branch state, im2col stack).  Only raise the
    # scoped limit when actually needed (v7x has 64 MiB physical VMEM).
    block_bytes = 2 * (2 * C * tile * x_isz) + 2 * (C * 2 * halo * x_isz)
    work_bytes = C * wp * x_isz + 4 * width * wp * 4 \
        + (kernel_size + 1) * width * wp * mm_isz
    param_bytes = 2 * (w_stk.size * mm_isz + 3 * b3.size * 4)
    vmem_need = block_bytes + work_bytes + param_bytes
    cp_kwargs = dict(dimension_semantics=("parallel", "parallel"))
    if vmem_need > 32 * 1024 * 1024:
        cp_kwargs["vmem_limit_bytes"] = int(
            min(100 * 1024 * 1024, int(vmem_need * 1.25)))

    return pl.pallas_call(
        kernel,
        out_shape=jax.ShapeDtypeStruct((B, C, T), x.dtype),
        grid=(B, num_t),
        in_specs=in_specs,
        out_specs=pl.BlockSpec((1, C, tile), lambda b, t: (b, 0, t)),
        compiler_params=pltpu.CompilerParams(**cp_kwargs),
        cost_estimate=pl.CostEstimate(
            flops=int(flops), transcendentals=0, bytes_accessed=bytes_accessed),
    )(*inputs)


def _reference(x, conv_w, conv_b, bn_gamma, bn_beta, bn_mean, bn_var, *,
               scale, kernel_size, padding, dilation, eps=1e-5):
    """Pure-JAX reference mirroring the PyTorch forward (inference BN)."""
    B, C, T = x.shape
    width = C // scale
    nums = scale if scale == 1 else scale - 1
    bn_sc = bn_gamma / jnp.sqrt(bn_var + eps)
    bn_sh = bn_beta - bn_mean * bn_sc
    spx = jnp.split(x, scale, axis=1)
    outs = []
    sp = None
    for i in range(nums):
        sp = spx[i] if i == 0 else sp + spx[i]
        wt = jnp.transpose(conv_w[i], (1, 2, 0))        # (K,out,in) -> (out,in,K)
        y = jax.lax.conv_general_dilated(
            sp, wt, window_strides=(1,), padding=[(padding, padding)],
            rhs_dilation=(dilation,),
            dimension_numbers=("NCH", "OIH", "NCH"))
        y = y + conv_b[i][None, :, None]
        y = jnp.maximum(y, 0.0)
        y = y * bn_sc[i][None, :, None] + bn_sh[i][None, :, None]
        outs.append(y)
        sp = y
    if scale != 1:
        outs.append(spx[nums])
    return jnp.concatenate(outs, axis=1)


def _make_params(key, C, scale, kernel_size):
    width = C // scale
    nums = scale if scale == 1 else scale - 1
    ks = jax.random.split(key, 6)
    conv_w = 0.15 * jax.random.normal(ks[0], (nums, kernel_size, width, width),
                                      jnp.float32)
    conv_b = 0.1 * jax.random.normal(ks[1], (nums, width), jnp.float32)
    gamma = 1.0 + 0.1 * jax.random.normal(ks[2], (nums, width), jnp.float32)
    beta = 0.1 * jax.random.normal(ks[3], (nums, width), jnp.float32)
    mean = 0.1 * jax.random.normal(ks[4], (nums, width), jnp.float32)
    var = 0.5 + jnp.abs(jax.random.normal(ks[5], (nums, width), jnp.float32))
    return conv_w, conv_b, gamma, beta, mean, var


if __name__ == "__main__":
    configs = [
        # multi-tile time tiling + halo + ragged last block (T not tile-multiple)
        dict(B=2, C=32, T=200, scale=4, kernel_size=3, padding=1, dilation=1, tile_t=128),
        # dilation + scale=8 cascade, single full-T tile
        dict(B=1, C=64, T=64, scale=8, kernel_size=3, padding=2, dilation=2, tile_t=512),
        # module defaults: pointwise conv, no padding/halo
        dict(B=2, C=32, T=96, scale=4, kernel_size=1, padding=0, dilation=1, tile_t=512),
    ]

    key = jax.random.PRNGKey(0)
    for ci, cfg in enumerate(configs):
        key, kx, kp = jax.random.split(key, 3)
        B, C, T = cfg["B"], cfg["C"], cfg["T"]
        x = jax.random.normal(kx, (B, C, T), dtype=jnp.float32)
        params = _make_params(kp, C, cfg["scale"], cfg["kernel_size"])

        ref = _reference(x, *params, scale=cfg["scale"],
                         kernel_size=cfg["kernel_size"], padding=cfg["padding"],
                         dilation=cfg["dilation"])

        # f32-matmul path: tight check of tiling / halo / ragged-block masking.
        out_f32 = res2conv1d_relu_bn(
            x, *params, scale=cfg["scale"], kernel_size=cfg["kernel_size"],
            padding=cfg["padding"], dilation=cfg["dilation"],
            tile_t=cfg["tile_t"], mm_dtype=jnp.float32)
        out_f32 = jax.block_until_ready(out_f32)
        assert out_f32.shape == (B, C, T)
        assert jnp.allclose(out_f32, ref, atol=1e-3, rtol=1e-3), f"f32 mismatch (cfg {ci})"

        # bf16-matmul fast path (MXU): loose tolerance vs the f32 reference.
        out_bf16 = res2conv1d_relu_bn(
            x, *params, scale=cfg["scale"], kernel_size=cfg["kernel_size"],
            padding=cfg["padding"], dilation=cfg["dilation"],
            tile_t=cfg["tile_t"], mm_dtype=jnp.bfloat16)
        out_bf16 = jax.block_until_ready(out_bf16)
        assert jnp.allclose(out_bf16, ref, atol=3e-2, rtol=3e-2), f"bf16 mismatch (cfg {ci})"

    # bf16 activation I/O path (halves HBM traffic for the mem-bound op).
    key, kx, kp = jax.random.split(key, 3)
    B, C, T = 2, 32, 300
    x_bf = jax.random.normal(kx, (B, C, T), jnp.float32).astype(jnp.bfloat16)
    params = _make_params(kp, C, 4, 3)
    ref = _reference(x_bf.astype(jnp.float32), *params, scale=4, kernel_size=3,
                     padding=1, dilation=1)
    out_io = res2conv1d_relu_bn(x_bf, *params, scale=4, kernel_size=3, padding=1,
                                dilation=1, tile_t=128, mm_dtype=jnp.bfloat16)
    out_io = jax.block_until_ready(out_io)
    assert out_io.dtype == jnp.bfloat16 and out_io.shape == (B, C, T)
    assert jnp.allclose(out_io.astype(jnp.float32), ref, atol=8e-2, rtol=8e-2), \
        "bf16-I/O mismatch"

    print("KERNEL_OK")
</pallas_src>

<mosaic_0001>
module attributes {stable_mosaic.version = 11 : i64} {
  func.func @_res2_kernel(%arg0: i32, %arg1: i32, %arg2: memref<1x32x128xf32, #tpu.memory_space<vmem>>, %arg3: memref<1x1x32x6xf32, #tpu.memory_space<vmem>>, %arg4: memref<3x8x24xf32, #tpu.memory_space<vmem>>, %arg5: memref<3x8x1xf32, #tpu.memory_space<vmem>>, %arg6: memref<3x8x1xf32, #tpu.memory_space<vmem>>, %arg7: memref<3x8x1xf32, #tpu.memory_space<vmem>>, %arg8: memref<1x32x128xf32, #tpu.memory_space<vmem>>) attributes {dimension_semantics = [#tpu.dimension_semantics<parallel>, #tpu.dimension_semantics<parallel>], iteration_bounds = array<i64: 2, 2>, scalar_prefetch = 0 : i64, scratch_operands = 0 : i64, tpu.core_type = #tpu.core_type<tc>, window_params = [{transform_indices = @transform_0, window_bounds = array<i64: 1, 32, 128>}, {transform_indices = @transform_1, window_bounds = array<i64: 1, 1, 32, 6>}, {pipeline_mode = #tpu.pipeline_mode<synchronous>, transform_indices = @transform_2, window_bounds = array<i64: 3, 8, 24>}, {pipeline_mode = #tpu.pipeline_mode<synchronous>, transform_indices = @transform_3, window_bounds = array<i64: 3, 8, 1>}, {pipeline_mode = #tpu.pipeline_mode<synchronous>, transform_indices = @transform_4, window_bounds = array<i64: 3, 8, 1>}, {pipeline_mode = #tpu.pipeline_mode<synchronous>, transform_indices = @transform_5, window_bounds = array<i64: 3, 8, 1>}, {transform_indices = @transform_6, window_bounds = array<i64: 1, 32, 128>}]} {
    %c0 = arith.constant 0 : index
    %c0_0 = arith.constant 0 : index
    %c0_1 = arith.constant 0 : index
    %0 = vector.load %arg2[%c0, %c0_0, %c0_1] : memref<1x32x128xf32, #tpu.memory_space<vmem>>, vector<1x32x128xf32>
    %1 = vector.shape_cast %0 : vector<1x32x128xf32> to vector<32x128xf32>
    %c0_2 = arith.constant 0 : index
    %c0_3 = arith.constant 0 : index
    %c0_4 = arith.constant 0 : index
    %c0_5 = arith.constant 0 : index
    %2 = vector.load %arg3[%c0_2, %c0_3, %c0_4, %c0_5] : memref<1x1x32x6xf32, #tpu.memory_space<vmem>>, vector<1x1x32x3xf32>
    %3 = vector.shape_cast %2 : vector<1x1x32x3xf32> to vector<32x3xf32>
    %c0_6 = arith.constant 0 : index
    %c0_7 = arith.constant 0 : index
    %c0_8 = arith.constant 0 : index
    %c3 = arith.constant 3 : index
    %4 = vector.load %arg3[%c0_6, %c0_7, %c0_8, %c3] : memref<1x1x32x6xf32, #tpu.memory_space<vmem>>, vector<1x1x32x3xf32>
    %5 = vector.shape_cast %4 : vector<1x1x32x3xf32> to vector<32x3xf32>
    %6 = tpu.concatenate %3, %1, %5 in 1 : vector<32x3xf32>, vector<32x128xf32>, vector<32x3xf32> -> vector<32x134xf32>
    %7 = tpu.iota {dimensions = array<i32: 1>} : vector<1x134xi32>
    %c128_i32 = arith.constant 128 : i32
    %8 = arith.muli %arg1, %c128_i32 : i32
    %c3_i32 = arith.constant 3 : i32
    %9 = arith.subi %8, %c3_i32 : i32
    %10 = vector.broadcast %9 : i32 to vector<1x134xi32>
    %11 = arith.addi %7, %10 : vector<1x134xi32>
    %c0_i32 = arith.constant 0 : i32
    %12 = vector.broadcast %c0_i32 : i32 to vector<1x134xi32>
    %13 = arith.cmpi sge, %11, %12 : vector<1x134xi32>
    %c200_i32 = arith.constant 200 : i32
    %14 = vector.broadcast %c200_i32 : i32 to vector<1x134xi32>
    %15 = arith.cmpi slt, %11, %14 : vector<1x134xi32>
    %16 = arith.andi %13, %15 : vector<1x134xi1>
    %17 = vector.extract_strided_slice %6 {offsets = [0, 0], sizes = [8, 134], strides = [1, 1]} : vector<32x134xf32> to vector<8x134xf32>
    %cst = arith.constant 0.000000e+00 : f32
    %18 = vector.shape_cast %16 : vector<1x134xi1> to vector<1x134xi1>
    %19 = vector.broadcast %18 : vector<1x134xi1> to vector<8x134xi1>
    %20 = vector.broadcast %cst : f32 to vector<8x134xf32>
    %21 = arith.select %19, %17, %20 : vector<8x134xi1>, vector<8x134xf32>
    %22 = vector.extract_strided_slice %21 {offsets = [0, 0], sizes = [8, 1], strides = [1, 1]} : vector<8x134xf32> to vector<8x1xf32>
    %23 = vector.extract_strided_slice %21 {offsets = [0, 133], sizes = [8, 1], strides = [1, 1]} : vector<8x134xf32> to vector<8x1xf32>
    %24 = tpu.concatenate %22, %21, %23 in 1 : vector<8x1xf32>, vector<8x134xf32>, vector<8x1xf32> -> vector<8x136xf32>
    %25 = vector.extract_strided_slice %24 {offsets = [0, 0], sizes = [8, 134], strides = [1, 1]} : vector<8x136xf32> to vector<8x134xf32>
    %26 = vector.extract_strided_slice %24 {offsets = [0, 1], sizes = [8, 134], strides = [1, 1]} : vector<8x136xf32> to vector<8x134xf32>
    %27 = vector.extract_strided_slice %24 {offsets = [0, 2], sizes = [8, 134], strides = [1, 1]} : vector<8x136xf32> to vector<8x134xf32>
    %28 = tpu.concatenate %25, %26, %27 in 0 : vector<8x134xf32>, vector<8x134xf32>, vector<8x134xf32> -> vector<24x134xf32>
    %c0_9 = arith.constant 0 : index
    %c0_10 = arith.constant 0 : index
    %c0_11 = arith.constant 0 : index
    %29 = vector.load %arg4[%c0_9, %c0_10, %c0_11] : memref<3x8x24xf32, #tpu.memory_space<vmem>>, vector<1x8x24xf32>
    %30 = vector.shape_cast %29 : vector<1x8x24xf32> to vector<8x24xf32>
    %cst_12 = arith.constant dense<0.000000e+00> : vector<8x134xf32>
    %31 = tpu.matmul %30, %28, %cst_12 {dimension_numbers = #tpu.dot_dimension_numbers<[1], [0], [0], [1], [0, 0, 1, 1], [], []>} : vector<8x24xf32>, vector<24x134xf32>, vector<8x134xf32> -> vector<8x134xf32>
    %c0_13 = arith.constant 0 : index
    %c0_14 = arith.constant 0 : index
    %c0_15 = arith.constant 0 : index
    %32 = vector.load %arg5[%c0_13, %c0_14, %c0_15] : memref<3x8x1xf32, #tpu.memory_space<vmem>>, vector<1x8x1xf32>
    %33 = vector.shape_cast %32 : vector<1x8x1xf32> to vector<8x1xf32>
    %34 = vector.broadcast %33 : vector<8x1xf32> to vector<8x134xf32>
    %35 = arith.addf %31, %34 : vector<8x134xf32>
    %cst_16 = arith.constant 0.000000e+00 : f32
    %36 = vector.broadcast %cst_16 : f32 to vector<8x134xf32>
    %37 = arith.maximumf %35, %36 : vector<8x134xf32>
    %c0_17 = arith.constant 0 : index
    %c0_18 = arith.constant 0 : index
    %c0_19 = arith.constant 0 : index
    %38 = vector.load %arg6[%c0_17, %c0_18, %c0_19] : memref<3x8x1xf32, #tpu.memory_space<vmem>>, vector<1x8x1xf32>
    %39 = vector.shape_cast %38 : vector<1x8x1xf32> to vector<8x1xf32>
    %40 = vector.broadcast %39 : vector<8x1xf32> to vector<8x134xf32>
    %41 = arith.mulf %37, %40 : vector<8x134xf32>
    %c0_20 = arith.constant 0 : index
    %c0_21 = arith.constant 0 : index
    %c0_22 = arith.constant 0 : index
    %42 = vector.load %arg7[%c0_20, %c0_21, %c0_22] : memref<3x8x1xf32, #tpu.memory_space<vmem>>, vector<1x8x1xf32>
    %43 = vector.shape_cast %42 : vector<1x8x1xf32> to vector<8x1xf32>
    %44 = vector.broadcast %43 : vector<8x1xf32> to vector<8x134xf32>
    %45 = arith.addf %41, %44 : vector<8x134xf32>
    %46 = vector.extract_strided_slice %45 {offsets = [0, 3], sizes = [8, 128], strides = [1, 1]} : vector<8x134xf32> to vector<8x128xf32>
    %c0_23 = arith.constant 0 : index
    %c0_24 = arith.constant 0 : index
    %c0_25 = arith.constant 0 : index
    %47 = vector.load %arg8[%c0_23, %c0_24, %c0_25] : memref<1x32x128xf32, #tpu.memory_space<vmem>>, vector<1x8x128xf32>
    %48 = vector.shape_cast %47 : vector<1x8x128xf32> to vector<8x128xf32>
    %49 = vector.shape_cast %46 : vector<8x128xf32> to vector<1x8x128xf32>
    tpu.vector_store %arg8[%c0_23, %c0_24, %c0_25], %49 {strides = array<i32>} : memref<1x32x128xf32, #tpu.memory_space<vmem>>, vector<1x8x128xf32>,
    %50 = vector.extract_strided_slice %6 {offsets = [8, 0], sizes = [8, 134], strides = [1, 1]} : vector<32x134xf32> to vector<8x134xf32>
    %51 = arith.addf %45, %50 : vector<8x134xf32>
    %cst_26 = arith.constant 0.000000e+00 : f32
    %52 = vector.shape_cast %16 : vector<1x134xi1> to vector<1x134xi1>
    %53 = vector.broadcast %52 : vector<1x134xi1> to vector<8x134xi1>
    %54 = vector.broadcast %cst_26 : f32 to vector<8x134xf32>
    %55 = arith.select %53, %51, %54 : vector<8x134xi1>, vector<8x134xf32>
    %56 = vector.extract_strided_slice %55 {offsets = [0, 0], sizes = [8, 1], strides = [1, 1]} : vector<8x134xf32> to vector<8x1xf32>
    %57 = vector.extract_strided_slice %55 {offsets = [0, 133], sizes = [8, 1], strides = [1, 1]} : vector<8x134xf32> to vector<8x1xf32>
    %58 = tpu.concatenate %56, %55, %57 in 1 : vector<8x1xf32>, vector<8x134xf32>, vector<8x1xf32> -> vector<8x136xf32>
    %59 = vector.extract_strided_slice %58 {offsets = [0, 0], sizes = [8, 134], strides = [1, 1]} : vector<8x136xf32> to vector<8x134xf32>
    %60 = vector.extract_strided_slice %58 {offsets = [0, 1], sizes = [8, 134], strides = [1, 1]} : vector<8x136xf32> to vector<8x134xf32>
    %61 = vector.extract_strided_slice %58 {offsets = [0, 2], sizes = [8, 134], strides = [1, 1]} : vector<8x136xf32> to vector<8x134xf32>
    %62 = tpu.concatenate %59, %60, %61 in 0 : vector<8x134xf32>, vector<8x134xf32>, vector<8x134xf32> -> vector<24x134xf32>
    %c1 = arith.constant 1 : index
    %c0_27 = arith.constant 0 : index
    %c0_28 = arith.constant 0 : index
    %63 = vector.load %arg4[%c1, %c0_27, %c0_28] : memref<3x8x24xf32, #tpu.memory_space<vmem>>, vector<1x8x24xf32>
    %64 = vector.shape_cast %63 : vector<1x8x24xf32> to vector<8x24xf32>
    %cst_29 = arith.constant dense<0.000000e+00> : vector<8x134xf32>
    %65 = tpu.matmul %64, %62, %cst_29 {dimension_numbers = #tpu.dot_dimension_numbers<[1], [0], [0], [1], [0, 0, 1, 1], [], []>} : vector<8x24xf32>, vector<24x134xf32>, vector<8x134xf32> -> vector<8x134xf32>
    %c1_30 = arith.constant 1 : index
    %c0_31 = arith.constant 0 : index
    %c0_32 = arith.constant 0 : index
    %66 = vector.load %arg5[%c1_30, %c0_31, %c0_32] : memref<3x8x1xf32, #tpu.memory_space<vmem>>, vector<1x8x1xf32>
    %67 = vector.shape_cast %66 : vector<1x8x1xf32> to vector<8x1xf32>
    %68 = vector.broadcast %67 : vector<8x1xf32> to vector<8x134xf32>
    %69 = arith.addf %65, %68 : vector<8x134xf32>
    %cst_33 = arith.constant 0.000000e+00 : f32
    %70 = vector.broadcast %cst_33 : f32 to vector<8x134xf32>
    %71 = arith.maximumf %69, %70 : vector<8x134xf32>
    %c1_34 = arith.constant 1 : index
    %c0_35 = arith.constant 0 : index
    %c0_36 = arith.constant 0 : index
    %72 = vector.load %arg6[%c1_34, %c0_35, %c0_36] : memref<3x8x1xf32, #tpu.memory_space<vmem>>, vector<1x8x1xf32>
    %73 = vector.shape_cast %72 : vector<1x8x1xf32> to vector<8x1xf32>
    %74 = vector.broadcast %73 : vector<8x1xf32> to vector<8x134xf32>
    %75 = arith.mulf %71, %74 : vector<8x134xf32>
    %c1_37 = arith.constant 1 : index
    %c0_38 = arith.constant 0 : index
    %c0_39 = arith.constant 0 : index
    %76 = vector.load %arg7[%c1_37, %c0_38, %c0_39] : memref<3x8x1xf32, #tpu.memory_space<vmem>>, vector<1x8x1xf32>
    %77 = vector.shape_cast %76 : vector<1x8x1xf32> to vector<8x1xf32>
    %78 = vector.broadcast %77 : vector<8x1xf32> to vector<8x134xf32>
    %79 = arith.addf %75, %78 : vector<8x134xf32>
    %80 = vector.extract_strided_slice %79 {offsets = [0, 3], sizes = [8, 128], strides = [1, 1]} : vector<8x134xf32> to vector<8x128xf32>
    %c0_40 = arith.constant 0 : index
    %c8 = arith.constant 8 : index
    %c0_41 = arith.constant 0 : index
    %81 = vector.load %arg8[%c0_40, %c8, %c0_41] : memref<1x32x128xf32, #tpu.memory_space<vmem>>, vector<1x8x128xf32>
    %82 = vector.shape_cast %81 : vector<1x8x128xf32> to vector<8x128xf32>
    %83 = vector.shape_cast %80 : vector<8x128xf32> to vector<1x8x128xf32>
    tpu.vector_store %arg8[%c0_40, %c8, %c0_41], %83 {strides = array<i32>} : memref<1x32x128xf32, #tpu.memory_space<vmem>>, vector<1x8x128xf32>,
    %84 = vector.extract_strided_slice %6 {offsets = [16, 0], sizes = [8, 134], strides = [1, 1]} : vector<32x134xf32> to vector<8x134xf32>
    %85 = arith.addf %79, %84 : vector<8x134xf32>
    %cst_42 = arith.constant 0.000000e+00 : f32
    %86 = vector.shape_cast %16 : vector<1x134xi1> to vector<1x134xi1>
    %87 = vector.broadcast %86 : vector<1x134xi1> to vector<8x134xi1>
    %88 = vector.broadcast %cst_42 : f32 to vector<8x134xf32>
    %89 = arith.select %87, %85, %88 : vector<8x134xi1>, vector<8x134xf32>
    %90 = vector.extract_strided_slice %89 {offsets = [0, 0], sizes = [8, 1], strides = [1, 1]} : vector<8x134xf32> to vector<8x1xf32>
    %91 = vector.extract_strided_slice %89 {offsets = [0, 133], sizes = [8, 1], strides = [1, 1]} : vector<8x134xf32> to vector<8x1xf32>
    %92 = tpu.concatenate %90, %89, %91 in 1 : vector<8x1xf32>, vector<8x134xf32>, vector<8x1xf32> -> vector<8x136xf32>
    %93 = vector.extract_strided_slice %92 {offsets = [0, 0], sizes = [8, 134], strides = [1, 1]} : vector<8x136xf32> to vector<8x134xf32>
    %94 = vector.extract_strided_slice %92 {offsets = [0, 1], sizes = [8, 134], strides = [1, 1]} : vector<8x136xf32> to vector<8x134xf32>
    %95 = vector.extract_strided_slice %92 {offsets = [0, 2], sizes = [8, 134], strides = [1, 1]} : vector<8x136xf32> to vector<8x134xf32>
    %96 = tpu.concatenate %93, %94, %95 in 0 : vector<8x134xf32>, vector<8x134xf32>, vector<8x134xf32> -> vector<24x134xf32>
    %c2 = arith.constant 2 : index
    %c0_43 = arith.constant 0 : index
    %c0_44 = arith.constant 0 : index
    %97 = vector.load %arg4[%c2, %c0_43, %c0_44] : memref<3x8x24xf32, #tpu.memory_space<vmem>>, vector<1x8x24xf32>
    %98 = vector.shape_cast %97 : vector<1x8x24xf32> to vector<8x24xf32>
    %cst_45 = arith.constant dense<0.000000e+00> : vector<8x134xf32>
    %99 = tpu.matmul %98, %96, %cst_45 {dimension_numbers = #tpu.dot_dimension_numbers<[1], [0], [0], [1], [0, 0, 1, 1], [], []>} : vector<8x24xf32>, vector<24x134xf32>, vector<8x134xf32> -> vector<8x134xf32>
    %c2_46 = arith.constant 2 : index
    %c0_47 = arith.constant 0 : index
    %c0_48 = arith.constant 0 : index
    %100 = vector.load %arg5[%c2_46, %c0_47, %c0_48] : memref<3x8x1xf32, #tpu.memory_space<vmem>>, vector<1x8x1xf32>
    %101 = vector.shape_cast %100 : vector<1x8x1xf32> to vector<8x1xf32>
    %102 = vector.broadcast %101 : vector<8x1xf32> to vector<8x134xf32>
    %103 = arith.addf %99, %102 : vector<8x134xf32>
    %cst_49 = arith.constant 0.000000e+00 : f32
    %104 = vector.broadcast %cst_49 : f32 to vector<8x134xf32>
    %105 = arith.maximumf %103, %104 : vector<8x134xf32>
    %c2_50 = arith.constant 2 : index
    %c0_51 = arith.constant 0 : index
    %c0_52 = arith.constant 0 : index
    %106 = vector.load %arg6[%c2_50, %c0_51, %c0_52] : memref<3x8x1xf32, #tpu.memory_space<vmem>>, vector<1x8x1xf32>
    %107 = vector.shape_cast %106 : vector<1x8x1xf32> to vector<8x1xf32>
    %108 = vector.broadcast %107 : vector<8x1xf32> to vector<8x134xf32>
    %109 = arith.mulf %105, %108 : vector<8x134xf32>
    %c2_53 = arith.constant 2 : index
    %c0_54 = arith.constant 0 : index
    %c0_55 = arith.constant 0 : index
    %110 = vector.load %arg7[%c2_53, %c0_54, %c0_55] : memref<3x8x1xf32, #tpu.memory_space<vmem>>, vector<1x8x1xf32>
    %111 = vector.shape_cast %110 : vector<1x8x1xf32> to vector<8x1xf32>
    %112 = vector.broadcast %111 : vector<8x1xf32> to vector<8x134xf32>
    %113 = arith.addf %109, %112 : vector<8x134xf32>
    %114 = vector.extract_strided_slice %113 {offsets = [0, 3], sizes = [8, 128], strides = [1, 1]} : vector<8x134xf32> to vector<8x128xf32>
    %c0_56 = arith.constant 0 : index
    %c16 = arith.constant 16 : index
    %c0_57 = arith.constant 0 : index
    %115 = vector.load %arg8[%c0_56, %c16, %c0_57] : memref<1x32x128xf32, #tpu.memory_space<vmem>>, vector<1x8x128xf32>
    %116 = vector.shape_cast %115 : vector<1x8x128xf32> to vector<8x128xf32>
    %117 = vector.shape_cast %114 : vector<8x128xf32> to vector<1x8x128xf32>
    tpu.vector_store %arg8[%c0_56, %c16, %c0_57], %117 {strides = array<i32>} : memref<1x32x128xf32, #tpu.memory_space<vmem>>, vector<1x8x128xf32>,
    %118 = vector.extract_strided_slice %1 {offsets = [24, 0], sizes = [8, 128], strides = [1, 1]} : vector<32x128xf32> to vector<8x128xf32>
    %c0_58 = arith.constant 0 : index
    %c24 = arith.constant 24 : index
    %c0_59 = arith.constant 0 : index
    %119 = vector.load %arg8[%c0_58, %c24, %c0_59] : memref<1x32x128xf32, #tpu.memory_space<vmem>>, vector<1x8x128xf32>
    %120 = vector.shape_cast %119 : vector<1x8x128xf32> to vector<8x128xf32>
    %121 = vector.shape_cast %118 : vector<8x128xf32> to vector<1x8x128xf32>
    tpu.vector_store %arg8[%c0_58, %c24, %c0_59], %121 {strides = array<i32>} : memref<1x32x128xf32, #tpu.memory_space<vmem>>, vector<1x8x128xf32>,
    return
  }
  func.func @transform_0(%arg0: i32, %arg1: i32) -> (i32, i32, i32) {
    %c0_i32 = arith.constant 0 : i32
    %c0_i32_0 = arith.constant 0 : i32
    return %arg0, %c0_i32, %arg1 : i32, i32, i32
  }
  func.func @transform_1(%arg0: i32, %arg1: i32) -> (i32, i32, i32, i32) {
    %c0_i32 = arith.constant 0 : i32
    %c0_i32_0 = arith.constant 0 : i32
    %c0_i32_1 = arith.constant 0 : i32
    return %arg0, %arg1, %c0_i32, %c0_i32_0 : i32, i32, i32, i32
  }
  func.func @transform_2(%arg0: i32, %arg1: i32) -> (i32, i32, i32) {
    %c0_i32 = arith.constant 0 : i32
    %c0_i32_0 = arith.constant 0 : i32
    %c0_i32_1 = arith.constant 0 : i32
    %c0_i32_2 = arith.constant 0 : i32
    return %c0_i32, %c0_i32_0, %c0_i32_1 : i32, i32, i32
  }
  func.func @transform_3(%arg0: i32, %arg1: i32) -> (i32, i32, i32) {
    %c0_i32 = arith.constant 0 : i32
    %c0_i32_0 = arith.constant 0 : i32
    %c0_i32_1 = arith.constant 0 : i32
    %c0_i32_2 = arith.constant 0 : i32
    return %c0_i32, %c0_i32_0, %c0_i32_1 : i32, i32, i32
  }
  func.func @transform_4(%arg0: i32, %arg1: i32) -> (i32, i32, i32) {
    %c0_i32 = arith.constant 0 : i32
    %c0_i32_0 = arith.constant 0 : i32
    %c0_i32_1 = arith.constant 0 : i32
    %c0_i32_2 = arith.constant 0 : i32
    return %c0_i32, %c0_i32_0, %c0_i32_1 : i32, i32, i32
  }
  func.func @transform_5(%arg0: i32, %arg1: i32) -> (i32, i32, i32) {
    %c0_i32 = arith.constant 0 : i32
    %c0_i32_0 = arith.constant 0 : i32
    %c0_i32_1 = arith.constant 0 : i32
    %c0_i32_2 = arith.constant 0 : i32
    return %c0_i32, %c0_i32_0, %c0_i32_1 : i32, i32, i32
  }
  func.func @transform_6(%arg0: i32, %arg1: i32) -> (i32, i32, i32) {
    %c0_i32 = arith.constant 0 : i32
    %c0_i32_0 = arith.constant 0 : i32
    return %arg0, %c0_i32, %arg1 : i32, i32, i32
  }
}

</mosaic_0001>

<bundles_post_ra>
// kernel: tpu_custom_call.1
= control target key start
LH: loop header
LB: loop body
LE: loop exit
PB: predicated region body
PF: predicated region fallthrough
CT: control target
= control target key end

     0   :  { %s1438_s0 = inlined_call_operand.vmem [shape: f32[2,32,200], index: 0, kind: input, shape index: {}]   ;;  %s1439_s1 = inlined_call_operand.vmem [shape: f32[2,2,32,6], index: 1, kind: input, shape index: {}]   ;;  %s1440_s2 = inlined_call_operand.vmem [shape: f32[3,8,24], index: 2, kind: input, shape index: {}]   ;;  %s1441_s3 = inlined_call_operand.vmem [shape: f32[3,8,1], index: 3, kind: input, shape index: {}]   ;;  %s1442_s4 = inlined_call_operand.vmem [shape: f32[3,8,1], index: 4, kind: input, shape index: {}]   ;;  %s1443_s5 = inlined_call_operand.vmem [shape: f32[3,8,1], index: 5, kind: input, shape index: {}]   ;;  %s1444_s6 = inlined_call_operand.hbm [shape: f32[2,32,200], index: 6, kind: output, shape index: {}]  }
   0x1   :  { %1451 = sst [smem:[#allocation7_spill]] %s1438_s0 }
   0x2   :  { %11 = vsyncpa [#allocation4], 0 }
   0x3   :  { %13 = vsyncpa [#allocation4 + $0x1], 0  ;;  %s1164_s21 = smov 0   ;;  %s1166_s22 = smov 0  }
   0x4   :  { %s1168_s23 = smov 0   ;;  %s1170_s24 = smov 0  }
   0x5   :  { %s1172_s25 = smov 0   ;;  %s1174_s26 = smov 0  }
   0x6   :  { %s1176_s27 = smov 0   ;;  %s1178_s28 = smov 0  }
   0x7 LB: > { %s860_s29 = sadd.s32 4294967295, %s1117_s28   ;;  %s861_s30 = sadd.s32 4294967294, %s1117_s28   ;;  %s1117_s28 = sphi %s1178_s28, %s19_s28   ;;  %s1113_s27 = sphi %s1176_s27, %s1471_s27   ;;  %s1109_s26 = sphi %s1174_s26, %s1470_s26   ;;  %s1105_s25 = sphi %s1172_s25, %s1469_s25   ;;  %s1101_s24 = sphi %s1170_s24, %s1468_s24   ;;  %s1097_s23 = sphi %s1168_s23, %s1467_s23   ;;  %s1093_s22 = sphi %s1166_s22, %s1466_s22   ;;  %s1089_s21 = sphi %s1164_s21, %s1465_s21  }
   0x8   : > { %s28_s7 = sadd.s32 1, %s1109_s26  ;;  %s31_s8 = sadd.s32 1, %s1113_s27 }
   0x9   : > { %p29_p0 = scmp.ge.s32.totalorder %s28_s7, 2  ;;  %p47_p1 = scmp.ne.s32.totalorder %s1097_s23, %s1093_s22 }
   0xa   : > { %p48_p2 = scmp.eq.s32.totalorder %s1117_s28, 0  ;;  %p191_p5 = scmp.eq.s32.totalorder %s860_s29, 3 }
   0xb   : > { %s1473_s7 = smov (%p29_p0, %s28_s7), 0  ;;  %s1475_s8 = smov (!%p29_p0, %s31_s8), %s1113_s27 }
   0xc   : > { %s36_s9 = ssub.s32 %s1109_s26, %s1473_s7  ;;  %p1216_p3 = por %p48_p2, %p47_p1 }
   0xd   : > { %p33_p4 = scmp.ge.s32.totalorder %s1475_s8, 2  ;;  %p196_p6 = scmp.ne.s32.totalorder %s1093_s22, %s1089_s21 }
   0xe   : > { %p197_p7 = scmp.eq.s32.totalorder %s861_s30, 3  ;;  %p1224_p8 = por %p191_p5, %p47_p1 }
   0xf   : > { %s1477_s8 = smov (%p33_p4, %s1475_s8), 0  ;;  %s40_s15 = sadd.s32 1, %s1097_s23 }
  0x10   : > { %1453 = sst [smem:[#allocation6_spill]] %s1477_s8  ;;  %p1228_p9 = por %p197_p7, %p196_p6 }
  0x11   : > { %s35_s13 = ssub.s32 %s1113_s27, %s1477_s8  ;;  %p863_p11 = scmp.ge.s32.totalorder %s1117_s28, 4 }
  0x12   : > { %s37_s14 = sor.u32 %s36_s9, %s35_s13 }
  0x13   : > { %p38_p10 = scmp.eq.s32.totalorder %s37_s14, 0  ;;  %225 = sbr.rel (%p863_p11) target bundleno = 38 (0x26), region = 32 }
  0x15   : > { %s1236_s16 = scalar_select %p38_p10, %s1097_s23, %s40_s15  }
  0x18   : > { %228 = sbr.rel (!%p1216_p3) target bundleno = 38 (0x26), region = 36  ;;  %s230_s17 = sand.u32 (%p1216_p3), 1, %s1097_s23  }
  0x19   : > { %s865_s18 = sshll.u32 (%p1216_p3), %s1113_s27, 3  ;;  %s864_s19 = sshll.u32 (%p1216_p3), %s230_s17, 5 }
  0x1a   : > { %s234_s20 = sadd.s32 (%p1216_p3), %s1109_s26, %s865_s18  ;;  %s1456_s0 = sld [smem:[#allocation7_spill]] (%p1216_p3) }
  0x1b   : > { %s866_s29 = sshll.u32 (%p1216_p3), %s234_s20, 3  ;;  %s232_s14 = scalar_lea.vmem (%p1216_p3), [#allocation2], %s864_s19 }
  0x20   : > { %s236_s13 = scalar_lea.vmem %s1456_s0, %s866_s29 }
  0x21   : > { %v271_v0 = vld [vmem:[%s236_s13] sm:$0xff]  ;;  %v273_v1 = vld [vmem:[%s236_s13 + $0x10] sm:$0xff] }
  0x22   : > { %v275_v2 = vld [vmem:[%s236_s13 + $0x20] sm:$0xff]  ;;  %272 = vst [vmem:[%s232_s14] sm:$0xff] %v271_v0  ;;  %v277_v3 = vld [vmem:[%s236_s13 + $0x30] sm:$0xff] }
  0x23   : > { %274 = vst [vmem:[%s232_s14 + $0x8] sm:$0xff] %v273_v1 }
  0x24   : > { %276 = vst [vmem:[%s232_s14 + $0x10] sm:$0xff] %v275_v2 }
  0x25   : > { %278 = vst [vmem:[%s232_s14 + $0x18] sm:$0xff] %v277_v3 }
  0x26 PF: > { %p867_p12 = scmp.ge.s32.totalorder %s1117_s28, 1  ;;  %p295_p13 = scmp.lt.s32.totalorder %s1117_s28, 5 }
  0x28   : > { %p296_p0 = pnand %p867_p12, %p295_p13 }
  0x29   : > { %s1445_s10 = sand.u32 (!%p296_p0), 1, %s1093_s22   ;;  %s1447_s19 = smov (!%p296_p0), 3  }
  0x2a   : > { %299 = sbr.rel (%p296_p0) target bundleno = 1435 (0x59b), region = 78  ;;  %s868_s15 = sshll.u32 (!%p296_p0), %s1445_s10, 5 }
  0x2b   : > { %s1252_s17 = scalar_lea.vmem (!%p296_p0), [#allocation2], %s868_s15  ;;  %s1256_s18 = scalar_lea.vmem (!%p296_p0), [#allocation3], %s868_s15 }
  0x2c   : > { %p340_p1 = scmp.lt.s32.totalorder (!%p296_p0), %s1105_s25, 1  ;;  %p342_p2 = scmp.lt.s32.totalorder (!%p296_p0), %s1101_s24, 1 }
  0x2d   : > { %s873_s30 = sshll.u32 (!%p296_p0), %s1101_s24, 7  ;;  %s1120_s0 = smov (!%p296_p0), 2  }
  0x2e   : > { %s874_s9 = sadd.s32 (!%p296_p0), 4294967293, %s873_s30  ;;  %s1121_s8 = smov (!%p296_p0), 1  }
  0x2f   : > { %v349_v4 = vld [vmem:[%s1252_s17] sm:$0xff]  ;;  %v352_v5 = vld [vmem:[%s1252_s17 + $0x18] sm:$0xff]  ;;  %s341_s20 = scalar_select %p340_p1, %s1105_s25, 1  ;;  %v375_v6 = vlaneseq  ;;  %v380_v9 = vstv %s874_s9  ;;  %vm368_vm4 = vcmask 23552   ;;  %vm401_vm7 = vcmask 7168   ;;  %v350_v33 = vld [vmem:[%s1252_s17 + $0x8] sm:$0xff] }
  0x30   : > { %738 = vst [vmem:[%s1256_s18 + $0x18] sm:$0xff] %v352_v5  ;;  %359 = vrot.lane.b32.xlu0 %v349_v4, %s1447_s19  ;;  %s343_s29 = scalar_select %p342_p2, %s1101_s24, 1  ;;  %vm409_vm8 = vcmask 56320   ;;  %v482_v29 = vld [vmem:[%s1442_s4] sm:$0xff]  ;;  %v1124_v31 = vmov 0   ;;  %vm425_vm9 = vcmask 1031168  }
  0x31   : > { %v376_v7 = vand.u32 127, %v375_v6  ;;  %s871_s14 = sshll.u32 %s341_s20, 3  ;;  %s1449_s20 = smov 126   ;;  %v490_v30 = vld [vmem:[%s1443_s5] sm:$0xff]  ;;  %991 = vset.pattern.permute.xlu0 %v1124_v31  ;;  %992 = vset.pattern.permute.xlu1 %v1124_v31  ;;  %vm417_vm10 = vcmask 1039360   ;;  %vm436_vm11 = vcmask 195584  }
  0x32   : > { %s870_s13 = sshll.u32 %s343_s29, 2  ;;  %v430_v32 = vld [vmem:[%s1441_s3] sm:$0xff]  ;;  %990 = vset.pattern.permute.xlu2 %v1124_v31  ;;  %v878_v1 = vld [vmem:[%s1441_s3 + $0x8] sm:$0xff]  ;;  %vm504_vm12 = vcmask 1022976   ;;  %s890_s9 = sshll.u32 %s1105_s25, 3 }
  0x33   : > { %v377_v8 = vadd.s32 128, %v376_v7  ;;  %s346_s10 = sadd.s32 %s871_s14, %s870_s13  ;;  %v381_v10 = vadd.s32 %v380_v9, %v376_v7  ;;  %v429_v42 = vld [vmem:[%s1440_s2] sm:$0xff]  ;;  %s1462_s14 = smov 126  }
  0x34   : > { %s872_s15 = sshll.u32 %s346_s10, 3  ;;  %s1122_s10 = smov 127  }
  0x35   : > { %v382_v11 = vadd.s32 %v380_v9, %v377_v8  ;;  %s1268_s19 = scalar_lea.vmem %s1439_s1, %s872_s15  ;;  %vm383_vm0 = vcmp.ge.s32.totalorder %v381_v10, 0  ;;  %vm385_vm1 = vcmp.lt.s32.totalorder %v381_v10, 200  ;;  %v882_v10 = vld [vmem:[%s1443_s5 + $0x8] sm:$0xff]  ;;  %s750_s13 = sadd.s32 %s1101_s24, %s890_s9 }
  0x36   : > { %v353_v12 = vld [vmem:[%s1268_s19] sm:$0xff]  ;;  %vm1271_vm5 = vmand %vm383_vm0, %vm385_vm1  ;;  %v354_v50 = vld [vmem:[%s1268_s19 + $0x8] sm:$0xff]  ;;  %s891_s15 = sshll.u32 %s750_s13, 3  ;;  %s1463_s30 = sand.u32 1, %s1093_s22  }
  0x37   : > { %vm384_vm2 = vcmp.ge.s32.totalorder %v382_v11, 0  ;;  %vm386_vm3 = vcmp.lt.s32.totalorder %v382_v11, 200  ;;  %v881_v11 = vld [vmem:[%s1442_s4 + $0x8] sm:$0xff]  ;;  %s1043_s9 = scalar_lea.hbm %s1444_s6, 128 }
  0x38   : > { %vm1275_vm6 = vmand %vm384_vm2, %vm386_vm3 }
  0xa2   : > { %v360_v15 = vpop.permute.xlu0 %359 }
  0xa3   : > { %v369_v16 = vsel %vm368_vm4, %v353_v12, %v360_v15  ;;  %v372_v17 = vsel %vm368_vm4, %v360_v15, %v353_v12  ;;  %v351_v12 = vld [vmem:[%s1252_s17 + $0x10] sm:$0xff] }
  0xa4   : > { %v394_v18 = vsel %vm1275_vm6, %v372_v17, 0.0  ;;  %v393_v19 = vsel %vm1271_vm5, %v369_v16, 0.0 }
  0xa5   : > { %405 = vrot.lane.b32.xlu1 %v394_v18, %s1120_s0  ;;  %v975_v20 = vpack.i.bf16 %v394_v18, %v393_v19 }
  0xa7   : > { %976 = vrot.lane.b32.xlu0 %v975_v20, %s1121_s8 }
  0xaf   : > { %485 = vperm.xlu0 %991, %v482_v29  }
 0x117   : > { %v406_v24 = vpop.permute.xlu1 %405 }
 0x119   : > { %v977_v21 = vpop.permute.xlu0 %976 }
 0x11a   : > { %v979_v22 = vunpack.i.h.bf16 %v977_v21  ;;  %v978_v23 = vunpack.i.l.bf16 %v977_v21 }
 0x11c   : > { %v402_v25 = vsel %vm401_vm7, %v978_v23, %v979_v22  ;;  %v408_v26 = vsel %vm401_vm7, %v393_v19, %v978_v23  ;;  %v877_v23 = vld [vmem:[%s1440_s2 + $0x8] sm:$0xff] }
 0x11d   : > { %v410_v27 = vsel %vm409_vm8, %v402_v25, %v406_v24 }
 0x11e   : > { %v985_v28 = vpack.i.bf16 %v410_v27, %v408_v26 }
 0x120   : > { %986 = vrot.lane.b32.xlu2 %v985_v28, %s1122_s10  ;;  %981 = vrot.lane.b32.xlu1 %v985_v28, %s1449_s20  ;;  %s1461_s20 = smov 3  }
 0x121   : > { %v486_v48 = vpop.permute.xlu0 %485 }
 0x128   : > { %493 = vperm.xlu1 %992, %v490_v30   ;;  %433 = vperm.xlu2 %990, %v430_v32   ;;  %v355_v30 = vld [vmem:[%s1268_s19 + $0x10] sm:$0xff] }
 0x130   : > { %361 = vrot.lane.b32.xlu2 %v350_v33, %s1461_s20 }
 0x17a   : > { %v987_v34 = vpop.permute.xlu2 %986 }
 0x17b   : > { %v988_v36 = vunpack.i.l.bf16 %v987_v34  ;;  %v989_v39 = vunpack.i.h.bf16 %v987_v34 }
 0x17d   : > { %v418_v41 = vsel %vm417_vm10, %v988_v36, %v989_v39 }
 0x182   : > { %v434_v43 = vpop.permute.xlu2 %433 }
 0x18a   : > { %v362_v51 = vpop.permute.xlu2 %361 }
 0x18b   : > { %v373_v56 = vsel %vm368_vm4, %v362_v51, %v354_v50  ;;  %v370_v58 = vsel %vm368_vm4, %v354_v50, %v362_v51 }
 0x192   : > { %v982_v35 = vpop.permute.xlu1 %981 }
 0x193   : > { %v983_v37 = vunpack.i.l.bf16 %v982_v35  ;;  %v984_v38 = vunpack.i.h.bf16 %v982_v35 }
 0x195   : > { %473 = vmatpush.msra.mxu1 %v984_v38  ;;  %v426_v40 = vsel %vm425_vm9, %v983_v37, %v984_v38 }
 0x196   : > { %453 = vmatpush.msra.mxu0 %v426_v40 }
 0x197   : > { %474 = vmatpush.msra.mxu1 %v989_v39 }
 0x198   : > { %454 = vmatpush.msra.mxu0 %v418_v41 }
 0x199   : > { %475 = vmatpush.msra.mxu1 %v410_v27 }
 0x19a   : > { %455 = vmatpush.msra.mxu0 %v408_v26  ;;  %876 = vmatmul.msk.f32.vlgmr.msra.gmra.mxu1 %vm436_vm11, %v429_v42  ;;  %v494_v53 = vpop.permute.xlu1 %493 }
 0x19b   : > { %875 = vmatmul.msk.f32.vlgmr.msra.gmra.mxu0 %vm436_vm11, %v429_v42 }
 0x217   : > { %v477_v44 = vpop.f32.mrf.mxu1 }
 0x218   : > { %v478_v45 = vadd.f32 %v477_v44, %v434_v43  ;;  %v457_v46 = vpop.f32.mrf.mxu0 }
 0x219   : > { %v458_v47 = vadd.f32 %v457_v46, %v434_v43  ;;  %v884_v46 = vld [vmem:[%s1441_s3 + $0x10] sm:$0xff] }
 0x21a   : > { %v481_v49 = vmax.f32 %v478_v45, 0.0 }
 0x21b   : > { %v480_v52 = vmax.f32 %v458_v47, 0.0 }
 0x21c   : > { %v489_v54 = vmul.f32 %v486_v48, %v481_v49 }
 0x21d   : > { %v488_v55 = vmul.f32 %v486_v48, %v480_v52 }
 0x21e   : > { %v1312_v57 = vadd.f32 %v494_v53, %v489_v54  ;;  %v887_v54 = vld [vmem:[%s1442_s4 + $0x10] sm:$0xff] }
 0x21f   : > { %v1315_v59 = vadd.f32 %v494_v53, %v488_v55  ;;  %v888_v53 = vld [vmem:[%s1443_s5 + $0x10] sm:$0xff] }
 0x220   : > { %v509_v60 = vadd.f32 %v1312_v57, %v373_v56 }
 0x221   : > { %v508_v61 = vadd.f32 %v1315_v59, %v370_v58 }
 0x222   : > { %v511_v62 = vsel %vm1275_vm6, %v509_v60, 0.0 }
 0x223   : > { %521 = vrot.lane.b32.xlu2 %v511_v62, %s1120_s0  ;;  %v510_v63 = vsel %vm1271_vm5, %v508_v61, 0.0 }
 0x224   : > { %v993_v0 = vpack.i.bf16 %v511_v62, %v510_v63 }
 0x226   : > { %994 = vrot.lane.b32.xlu1 %v993_v0, %s1121_s8 }
 0x22b   : > { %548 = vperm.xlu2 %990, %v878_v1  }
 0x233   : > { %363 = vrot.lane.b32.xlu2 %v351_v12, %s1461_s20  ;;  %s1125_s20 = smov 125  }
 0x27d   : > { %v522_v5 = vpop.permute.xlu2 %521 }
 0x285   : > { %v549_v24 = vpop.permute.xlu2 %548 }
 0x28d   : > { %v364_v31 = vpop.permute.xlu2 %363 }
 0x28e   : > { %v374_v37 = vsel %vm368_vm4, %v364_v31, %v355_v30  ;;  %v371_v38 = vsel %vm368_vm4, %v355_v30, %v364_v31 }
 0x298   : > { %v995_v2 = vpop.permute.xlu1 %994 }
 0x299   : > { %v997_v3 = vunpack.i.h.bf16 %v995_v2  ;;  %v996_v4 = vunpack.i.l.bf16 %v995_v2 }
 0x29b   : > { %v518_v6 = vsel %vm401_vm7, %v996_v4, %v997_v3  ;;  %v524_v7 = vsel %vm401_vm7, %v510_v63, %v996_v4  ;;  %v883_v4 = vld [vmem:[%s1440_s2 + $0x10] sm:$0xff] }
 0x29c   : > { %v525_v8 = vsel %vm409_vm8, %v518_v6, %v522_v5 }
 0x29d   : > { %v1003_v9 = vpack.i.bf16 %v525_v8, %v524_v7 }
 0x29f   : > { %1004 = vrot.lane.b32.xlu1 %v1003_v9, %s1122_s10  ;;  %999 = vrot.lane.b32.xlu0 %v1003_v9, %s1462_s14 }
 0x2a7   : > { %609 = vperm.xlu1 %992, %v882_v10   ;;  %600 = vperm.xlu0 %991, %v881_v11  }
 0x311   : > { %v1005_v15 = vpop.permute.xlu1 %1004  ;;  %v1000_v16 = vpop.permute.xlu0 %999 }
 0x312   : > { %v1006_v17 = vunpack.i.l.bf16 %v1005_v15  ;;  %v1001_v18 = vunpack.i.l.bf16 %v1000_v16  ;;  %v1002_v19 = vunpack.i.h.bf16 %v1000_v16  ;;  %v1007_v20 = vunpack.i.h.bf16 %v1005_v15 }
 0x314   : > { %587 = vmatpush.msra.mxu3 %v1002_v19  ;;  %v539_v21 = vsel %vm425_vm9, %v1001_v18, %v1002_v19  ;;  %v532_v22 = vsel %vm417_vm10, %v1006_v17, %v1007_v20 }
 0x315   : > { %567 = vmatpush.msra.mxu2 %v539_v21 }
 0x316   : > { %588 = vmatpush.msra.mxu3 %v1007_v20 }
 0x317   : > { %568 = vmatpush.msra.mxu2 %v532_v22 }
 0x318   : > { %589 = vmatpush.msra.mxu3 %v525_v8 }
 0x319   : > { %569 = vmatpush.msra.mxu2 %v524_v7  ;;  %880 = vmatmul.msk.f32.vlgmr.msra.gmra.mxu3 %vm436_vm11, %v877_v23  ;;  %v601_v32 = vpop.permute.xlu0 %600  ;;  %v610_v35 = vpop.permute.xlu1 %609 }
 0x31a   : > { %879 = vmatmul.msk.f32.vlgmr.msra.gmra.mxu2 %vm436_vm11, %v877_v23 }
 0x39c   : > { %v591_v25 = vpop.f32.mrf.mxu3 }
 0x39d   : > { %v592_v26 = vadd.f32 %v591_v25, %v549_v24  ;;  %v571_v27 = vpop.f32.mrf.mxu2 }
 0x39e   : > { %v572_v28 = vadd.f32 %v571_v27, %v549_v24 }
 0x39f   : > { %v595_v29 = vmax.f32 %v592_v26, 0.0 }
 0x3a0   : > { %v594_v33 = vmax.f32 %v572_v28, 0.0 }
 0x3a1   : > { %v604_v34 = vmul.f32 %v601_v32, %v595_v29 }
 0x3a2   : > { %v603_v36 = vmul.f32 %v601_v32, %v594_v33 }
 0x3a3   : > { %v613_v39 = vadd.f32 %v610_v35, %v604_v34 }
 0x3a4   : > { %v612_v40 = vadd.f32 %v610_v35, %v603_v36 }
 0x3a5   : > { %v624_v41 = vadd.f32 %v613_v39, %v374_v37 }
 0x3a6   : > { %v623_v42 = vadd.f32 %v612_v40, %v371_v38 }
 0x3a7   : > { %v626_v43 = vsel %vm1275_vm6, %v624_v41, 0.0 }
 0x3a8   : > { %636 = vrot.lane.b32.xlu1 %v626_v43, %s1120_s0  ;;  %v625_v44 = vsel %vm1271_vm5, %v623_v42, 0.0  ;;  %s752_s0 = scalar_lea.hbm %s1444_s6, %s891_s15 }
 0x3a9   : > { %v1008_v45 = vpack.i.bf16 %v626_v43, %v625_v44  ;;  %s755_s29 = sshll.u32 %s752_s0, 4  ;;  %s756_s29 = int_to_ptr.hbm [resolvable:$true] %s755_s29 }
 0x3ab   : > { %1009 = vrot.lane.b32.xlu0 %v1008_v45, %s1121_s8  ;;  %s753_s8 = sshll.u32 %s1256_s18, 4  ;;  %s754_s8 = int_to_ptr.vmem [resolvable:$true] %s753_s8 }
 0x3b0   : > { %663 = vperm.xlu1 %992, %v884_v46  }
 0x3b8   : > { %500 = vrot.lane.b32.xlu1 %v1315_v59, %s1125_s20 }
 0x3c0   : > { %618 = vrot.lane.b32.xlu1 %v613_v39, %s1125_s20 }
 0x41a   : > { %v637_v49 = vpop.permute.xlu1 %636 }
 0x41d   : > { %v1010_v14 = vpop.permute.xlu0 %1009 }
 0x41e   : > { %v1012_v47 = vunpack.i.h.bf16 %v1010_v14  ;;  %v1011_v48 = vunpack.i.l.bf16 %v1010_v14 }
 0x420   : > { %v633_v13 = vsel %vm401_vm7, %v1011_v48, %v1012_v47  ;;  %v639_v50 = vsel %vm401_vm7, %v625_v44, %v1011_v48 }
 0x421   : > { %v640_v51 = vsel %vm409_vm8, %v633_v13, %v637_v49 }
 0x422   : > { %v1018_v52 = vpack.i.bf16 %v640_v51, %v639_v50  ;;  %v664_v60 = vpop.permute.xlu1 %663 }
 0x424   : > { %1019 = vrot.lane.b32.xlu0 %v1018_v52, %s1122_s10  ;;  %1014 = vrot.lane.b32.xlu2 %v1018_v52, %s1462_s14  ;;  %s740_s10 = scalar_lea.sflag [#allocation4], %s1463_s30 }
 0x42a   : > { %v501_v62 = vpop.permute.xlu1 %500 }
 0x42c   : > { %724 = vperm.xlu0 %991, %v888_v53   ;;  %715 = vperm.xlu2 %990, %v887_v54  }
 0x432   : > { %v619_v6 = vpop.permute.xlu1 %618 }
 0x434   : > { %616 = vrot.lane.b32.xlu0 %v612_v40, %s1125_s20  ;;  %502 = vrot.lane.b32.xlu2 %v1312_v57, %s1125_s20 }
 0x47e   : > { %v1015_v55 = vpop.permute.xlu2 %1014 }
 0x47f   : > { %v1016_v56 = vunpack.i.l.bf16 %v1015_v55  ;;  %v1017_v58 = vunpack.i.h.bf16 %v1015_v55 }
 0x481   : > { %702 = vmatpush.msrb.mxu1 %v1017_v58  ;;  %v654_v59 = vsel %vm425_vm9, %v1016_v56, %v1017_v58 }
 0x482   : > { %682 = vmatpush.msrb.mxu0 %v654_v59 }
 0x486   : > { %v716_v61 = vpop.permute.xlu2 %715 }
 0x48e   : > { %v503_v63 = vpop.permute.xlu2 %502 }
 0x48f   : > { %v505_v0 = vsel %vm504_vm12, %v501_v62, %v503_v63 }
 0x490   : > { %507 = vst [vmem:[%s1256_s18] sm:$0xff] %v505_v0 }
 0x496   : > { %v1020_v1 = vpop.permute.xlu0 %1019 }
 0x497   : > { %v1021_v2 = vunpack.i.l.bf16 %v1020_v1  ;;  %v1022_v3 = vunpack.i.h.bf16 %v1020_v1 }
 0x499   : > { %703 = vmatpush.msrb.mxu1 %v1022_v3  ;;  %v647_v57 = vsel %vm417_vm10, %v1021_v2, %v1022_v3 }
 0x49a   : > { %683 = vmatpush.msrb.mxu0 %v647_v57 }
 0x49b   : > { %704 = vmatpush.msrb.mxu1 %v640_v51 }
 0x49c   : > { %684 = vmatpush.msrb.mxu0 %v639_v50  ;;  %886 = vmatmul.msk.f32.vlgmr.msrb.gmra.mxu1 %vm436_vm11, %v883_v4 }
 0x49d   : > { %885 = vmatmul.msk.f32.vlgmr.msrb.gmra.mxu0 %vm436_vm11, %v883_v4 }
 0x49e   : > { %v725_v5 = vpop.permute.xlu0 %724 }
 0x4a6   : > { %v617_v7 = vpop.permute.xlu0 %616 }
 0x4a7   : > { %v620_v8 = vsel %vm504_vm12, %v617_v7, %v619_v6 }
 0x4a8   : > { %622 = vst [vmem:[%s1256_s18 + $0x8] sm:$0xff] %v620_v8 }
 0x519   : > { %v706_v9 = vpop.f32.mrf.mxu1 }
 0x51a   : > { %v707_v10 = vadd.f32 %v706_v9, %v664_v60  ;;  %v686_v11 = vpop.f32.mrf.mxu0 }
 0x51b   : > { %v687_v12 = vadd.f32 %v686_v11, %v664_v60 }
 0x51c   : > { %v710_v15 = vmax.f32 %v707_v10, 0.0 }
 0x51d   : > { %v709_v16 = vmax.f32 %v687_v12, 0.0 }
 0x51e   : > { %v719_v17 = vmul.f32 %v716_v61, %v710_v15 }
 0x51f   : > { %v718_v18 = vmul.f32 %v716_v61, %v709_v16 }
 0x520   : > { %v728_v19 = vadd.f32 %v725_v5, %v719_v17 }
 0x521   : > { %v727_v20 = vadd.f32 %v725_v5, %v718_v18 }
 0x522   : > { %733 = vrot.lane.b32.xlu0 %v728_v19, %s1125_s20 }
 0x523   : > { %731 = vrot.lane.b32.xlu2 %v727_v20, %s1125_s20  ;;  %s1037_s20 = sshra.s32 %s756_s29, 4  ;;  %s1038_s20 = int_to_ptr.hbm [resolvable:$true] %s1037_s20 }
 0x524   : > { %s1039_s24 = scalar_lea.hbm %s1038_s20, 32  ;;  %p1044_p6 = scmp.lt.s32.totalorder %s1038_s20, %s1444_s6 }
 0x525   : > { %p1040_p3 = scmp.ne.s32.totalorder %s1038_s20, %s1039_s24  ;;  %p1045_p7 = scmp.lt.s32.totalorder %s1043_s9, %s1039_s24 }
 0x527   : > { %p1041_p4 = pnand %p1040_p3, %p1224_p8  ;;  %p1046_p10 = por %p1045_p7, %p1044_p6 }
 0x529   : > { %p1042_p5 = pneg %p1041_p4 }
 0x52b   : > { %p1047_p11 = pnand %p1046_p10, %p1042_p5 }
 0x57d   : > { %v732_v21 = vpop.permute.xlu2 %731 }
 0x594   : > { %v734_v22 = vpop.permute.xlu0 %733 }
 0x595   : > { %v735_v23 = vsel %vm504_vm12, %v732_v21, %v734_v22 }
 0x596   : > { %737 = vst [vmem:[%s1256_s18 + $0x10] sm:$0xff] %v735_v23 }
 0x597   : > { %1050 = shalt.err (!%p1047_p11)
}
 0x598   : > { %s1126_s18 = smov 128   ;;  %s1127_s17 = smov 256  }
 0x599   : > { %s1128_s19 = smov 8  }
 0x59a   : > { %894 = dma.vmem_to_hbm [thread:$0]  (%p1224_p8), %s754_s8, 512, %s756_s29, %s740_s10, %s1126_s18, %s1127_s17, %s1128_s19  }
 0x59b PF: > { %p900_p12 = scmp.ge.s32.totalorder %s1117_s28, 2  ;;  %s770_s0 = sand.u32 1, %s1089_s21  }
 0x59c   : > { %s771_s30 = scalar_lea.sflag [#allocation4], %s770_s0 }
 0x59d   : > { %p897_p13 = pnand %p900_p12, %p1228_p9 }
 0x59f   : > { %p898_p0 = pneg %p897_p13 }
 0x5a1   : > { %1084 = dma.done.wait (%p898_p0), %s771_s30, 512  }
 0x5a2   : > { %1086 = vsyncadd (%p898_p0), %s771_s30, 4294966784  ;;  %s19_s28 = sadd.s32 1, %s1117_s28   ;;  %s1464_s11 = sld [smem:[#allocation6_spill]] }
 0x5a3   : > { %p16_p1 = scmp.ge.s32.totalorder %s19_s28, 6   ;;  %s1465_s21 = smov %s1093_s22 }
 0x5a4   : > { %s1466_s22 = smov %s1097_s23  ;;  %s1467_s23 = smov %s1236_s16 }
 0x5a5   : > { %s1468_s24 = smov %s1109_s26  ;;  %s1469_s25 = smov %s1113_s27 }
 0x5a6   : > { %s1470_s26 = smov %s1473_s7  ;;  %18 = sbr.rel (!%p16_p1) target bundleno = 7 (0x7), region = 133 }
 0x5a8   : > { %s1471_s27 = smov %s1464_s11 }
 0x5ab   :  { %777 = vsyncpa [#allocation4], 1 }
 0x5ac   :  { %779 = vsyncpa [#allocation4 + $0x1], 1 }

</bundles_post_ra>
